<compile_context>
chip_gen: v7x
topology: tpu7x:2x2x1
jax: 0.10.0
libtpu: 0.0.40
codegen_flags: <defaults>
</compile_context>

<pallas_src>
import jax
import jax.numpy as jnp
from jax.experimental import pallas as pl
from jax.experimental.pallas import tpu as pltpu


def _round_up(x, m):
    return (x + m - 1) // m * m


def _vmem_capacity_bytes():
    """Physical VMEM of the current TPU generation (fallback: v7x's 64 MiB)."""
    try:
        info = pltpu.get_tpu_info()
        cap = getattr(info, "vmem_capacity_bytes", None)
        if cap:
            return int(cap)
    except Exception:
        pass
    return 64 * 1024 * 1024


def _hub_scores_masked_kernel(x_ref, w_ref, b_ref, m_ref, o_ref):
    # x_ref: (TR, E) VMEM embeddings row tile (native dtype, upcast in-kernel)
    # w_ref: (1, E)  VMEM linear weight (out_features = 1), resident
    # b_ref: (1,)    SMEM linear bias
    # m_ref: (TR, 1) VMEM int32 mask (nonzero = keep)
    # o_ref: (TR, 1) VMEM scores
    x = x_ref[...].astype(jnp.float32)               # (TR, E), VPU upcast
    w = w_ref[...]                                   # (1, E) sublane broadcast
    # VPU multiply + XLU lane-reduce over E (no MXU: output width is 1).
    scores = jnp.sum(x * w, axis=-1, keepdims=True) + b_ref[0]   # (TR, 1)
    o_ref[...] = jnp.where(m_ref[...] != 0, scores, -jnp.inf).astype(o_ref.dtype)


def _hub_scores_kernel(x_ref, w_ref, b_ref, o_ref):
    # No-mask specialization: same as above without the mask stream.
    x = x_ref[...].astype(jnp.float32)
    w = w_ref[...]
    scores = jnp.sum(x * w, axis=-1, keepdims=True) + b_ref[0]
    o_ref[...] = scores.astype(o_ref.dtype)


def hub_selector(embeddings, weight, bias, mask=None):
    """embeddings: (..., E) float; weight: (1, E); bias: (1,);
    mask: optional (...,) bool.  Returns f32 scores shaped embeddings.shape[:-1]."""
    *lead, E = embeddings.shape
    lead = tuple(lead)
    R = 1
    for d in lead:
        R *= d

    # Stream embeddings in their native float dtype; upcast to f32 in-kernel.
    x_dtype = embeddings.dtype
    if not jnp.issubdtype(x_dtype, jnp.floating):
        x_dtype = jnp.float32
    x2 = embeddings.reshape(R, E).astype(x_dtype)
    w2 = weight.reshape(1, E).astype(jnp.float32)
    b1 = bias.reshape(1).astype(jnp.float32)

    # Generation-aware budgets: v7x has 64 MiB physical VMEM, v5e/v6e 128 MiB.
    vmem_cap = _vmem_capacity_bytes()
    vmem_limit = min(vmem_cap * 3 // 4, 64 * 1024 * 1024)      # 48 MiB v7x, 64 MiB v5e/v6e
    target_tile_bytes = max(2 * 1024 * 1024, vmem_limit // 4)  # per x buffer (double-buffered)

    bytes_per_row = E * x2.dtype.itemsize
    tr = max(8, (target_tile_bytes // bytes_per_row) // 8 * 8)
    # Keep >= ~8 grid steps when R permits: shards the "parallel" row axis
    # across both v7x TensorCores and leaves room for pipelining on every gen.
    tr = min(tr, max(8, _round_up(pl.cdiv(R, 8), 8)))
    grid = (pl.cdiv(R, tr),)   # ragged last block handled by Pallas; no jnp.pad copy
    # Safety: never set the scoped limit below what the pipeline itself needs.
    vmem_limit = max(vmem_limit, 4 * tr * bytes_per_row + (2 << 20))

    in_specs = [
        pl.BlockSpec((tr, E), lambda i: (i, 0)),      # embeddings row tile
        pl.BlockSpec((1, E), lambda i: (0, 0)),       # weight (constant block)
        pl.BlockSpec(memory_space=pltpu.SMEM),        # bias scalar
    ]
    args = [x2, w2, b1]
    kernel = _hub_scores_kernel
    mask_bytes = 0
    if mask is not None:
        m2 = mask.reshape(R, 1).astype(jnp.int32)
        in_specs.append(pl.BlockSpec((tr, 1), lambda i: (i, 0)))
        args.append(m2)
        kernel = _hub_scores_masked_kernel
        mask_bytes = R * 4

    cost = pl.CostEstimate(
        flops=2 * R * E,
        transcendentals=0,
        bytes_accessed=R * bytes_per_row + E * 4 + 4 + mask_bytes + R * 4,
    )

    out = pl.pallas_call(
        kernel,
        out_shape=jax.ShapeDtypeStruct((R, 1), jnp.float32),
        grid_spec=pltpu.PrefetchScalarGridSpec(
            num_scalar_prefetch=0,
            grid=grid,
            in_specs=in_specs,
            out_specs=pl.BlockSpec((tr, 1), lambda i: (i, 0)),
        ),
        compiler_params=pltpu.CompilerParams(
            dimension_semantics=("parallel",),
            vmem_limit_bytes=int(vmem_limit),
        ),
        cost_estimate=cost,
    )(*args)

    return out[:, 0].reshape(lead)


if __name__ == "__main__":
    # Small shapes consistent with the module: batch=2, seq=8, embedding=2048*2.
    B, S, E = 2, 8, 4096

    key = jax.random.PRNGKey(0)
    k_x, k_w, k_b, k_m = jax.random.split(key, 4)

    embeddings = jax.random.normal(k_x, (B, S, E), dtype=jnp.float32)
    # Deterministic nn.Linear(E, 1)-style parameters: shapes (1, E) and (1,).
    bound = 1.0 / (E ** 0.5)
    weight = jax.random.uniform(k_w, (1, E), jnp.float32, -bound, bound)
    bias = jax.random.uniform(k_b, (1,), jnp.float32, -bound, bound)
    mask = jax.random.bernoulli(k_m, p=0.7, shape=(B, S))

    scores = hub_selector(embeddings, weight, bias, mask)
    scores_nomask = hub_selector(embeddings, weight, bias, None)

    # Ragged-boundary case (R=15 not a multiple of the 8-row tile) exercises
    # the pad-free cdiv-grid path: boundary block reads/writes are masked.
    emb_ragged = embeddings.reshape(B * S, E)[:15].reshape(3, 5, E)
    mask_ragged = mask.reshape(B * S)[:15].reshape(3, 5)
    scores_ragged = hub_selector(emb_ragged, weight, bias, mask_ragged)

    # bf16 streaming path: input stays bf16 in HBM, f32 accumulate in-kernel.
    emb_bf16 = embeddings.astype(jnp.bfloat16)
    scores_bf16 = hub_selector(emb_bf16, weight, bias, None)

    scores, scores_nomask, scores_ragged, scores_bf16 = jax.block_until_ready(
        (scores, scores_nomask, scores_ragged, scores_bf16))

    # Pure-JAX references (f32 multiply + reduce; reduction order differs from
    # torch's addmm path, hence the 2e-3 tolerance).
    ref = jnp.sum(embeddings * weight[0], axis=-1) + bias[0]
    ref_masked = jnp.where(mask, ref, -jnp.inf)
    ref_ragged = jnp.sum(emb_ragged * weight[0], axis=-1) + bias[0]
    ref_bf16 = jnp.sum(emb_bf16.astype(jnp.float32) * weight[0], axis=-1) + bias[0]

    assert scores.shape == (B, S)
    assert scores_nomask.shape == (B, S)
    assert scores_ragged.shape == (3, 5)
    assert scores_bf16.shape == (B, S)
    assert jnp.allclose(scores_nomask, ref, atol=2e-3, rtol=2e-3)
    assert jnp.allclose(
        jnp.where(mask, scores, 0.0), jnp.where(mask, ref_masked, 0.0),
        atol=2e-3, rtol=2e-3)
    assert bool(jnp.all(jnp.where(mask, True, jnp.isneginf(scores))))
    assert jnp.allclose(
        jnp.where(mask_ragged, scores_ragged, 0.0),
        jnp.where(mask_ragged, ref_ragged, 0.0),
        atol=2e-3, rtol=2e-3)
    assert bool(jnp.all(jnp.where(mask_ragged, True, jnp.isneginf(scores_ragged))))
    assert jnp.allclose(scores_bf16, ref_bf16, atol=2e-3, rtol=2e-3)

    print("KERNEL_OK")
</pallas_src>

<mosaic_0001>
module attributes {stable_mosaic.version = 11 : i64} {
  func.func @_hub_scores_masked_kernel(%arg0: i32, %arg1: memref<8x4096xf32, #tpu.memory_space<vmem>>, %arg2: memref<1x4096xf32, #tpu.memory_space<vmem>>, %arg3: memref<1xf32, #tpu.memory_space<smem>>, %arg4: memref<8x1xi32, #tpu.memory_space<vmem>>, %arg5: memref<8x1xf32, #tpu.memory_space<vmem>>) attributes {dimension_semantics = [#tpu.dimension_semantics<parallel>], iteration_bounds = array<i64: 2>, scalar_prefetch = 0 : i64, scratch_operands = 0 : i64, tpu.core_type = #tpu.core_type<tc>, window_params = [{transform_indices = @transform_0, window_bounds = array<i64: 8, 4096>}, {pipeline_mode = #tpu.pipeline_mode<synchronous>, transform_indices = @transform_1, window_bounds = array<i64: 1, 4096>}, {transform_indices = @transform_2, window_bounds = array<i64: 1>}, {transform_indices = @transform_3, window_bounds = array<i64: 8, 1>}, {transform_indices = @transform_4, window_bounds = array<i64: 8, 1>}]} {
    %c0 = arith.constant 0 : index
    %c0_0 = arith.constant 0 : index
    %0 = vector.load %arg1[%c0, %c0_0] : memref<8x4096xf32, #tpu.memory_space<vmem>>, vector<8x4096xf32>
    %c0_1 = arith.constant 0 : index
    %c0_2 = arith.constant 0 : index
    %1 = vector.load %arg2[%c0_1, %c0_2] : memref<1x4096xf32, #tpu.memory_space<vmem>>, vector<1x4096xf32>
    %2 = vector.broadcast %1 : vector<1x4096xf32> to vector<8x4096xf32>
    %3 = arith.mulf %0, %2 : vector<8x4096xf32>
    %cst = arith.constant dense<0.000000e+00> : vector<8xf32>
    %4 = vector.multi_reduction <add>, %3, %cst [1] : vector<8x4096xf32> to vector<8xf32>
    %5 = vector.shape_cast %4 : vector<8xf32> to vector<8x1xf32>
    %c0_3 = arith.constant 0 : index
    %6 = memref.load %arg3[%c0_3] : memref<1xf32, #tpu.memory_space<smem>>
    %7 = vector.broadcast %6 : f32 to vector<8x1xf32>
    %8 = arith.addf %5, %7 : vector<8x1xf32>
    %c0_4 = arith.constant 0 : index
    %c0_5 = arith.constant 0 : index
    %9 = vector.load %arg4[%c0_4, %c0_5] : memref<8x1xi32, #tpu.memory_space<vmem>>, vector<8x1xi32>
    %c0_i32 = arith.constant 0 : i32
    %10 = vector.broadcast %c0_i32 : i32 to vector<8x1xi32>
    %11 = arith.cmpi ne, %9, %10 : vector<8x1xi32>
    %cst_6 = arith.constant 0xFF800000 : f32
    %12 = vector.broadcast %cst_6 : f32 to vector<8x1xf32>
    %13 = arith.select %11, %8, %12 : vector<8x1xi1>, vector<8x1xf32>
    %c0_7 = arith.constant 0 : index
    %c0_8 = arith.constant 0 : index
    %14 = vector.load %arg5[%c0_7, %c0_8] : memref<8x1xf32, #tpu.memory_space<vmem>>, vector<8x1xf32>
    tpu.vector_store %arg5[%c0_7, %c0_8], %13 {strides = array<i32>} : memref<8x1xf32, #tpu.memory_space<vmem>>, vector<8x1xf32>,
    return
  }
  func.func @transform_0(%arg0: i32) -> (i32, i32) {
    %c0_i32 = arith.constant 0 : i32
    %c0_i32_0 = arith.constant 0 : i32
    return %arg0, %c0_i32 : i32, i32
  }
  func.func @transform_1(%arg0: i32) -> (i32, i32) {
    %c0_i32 = arith.constant 0 : i32
    %c0_i32_0 = arith.constant 0 : i32
    %c0_i32_1 = arith.constant 0 : i32
    return %c0_i32, %c0_i32_0 : i32, i32
  }
  func.func @transform_2(%arg0: i32) -> i32 {
    %c0_i32 = arith.constant 0 : i32
    %c0_i32_0 = arith.constant 0 : i32
    return %c0_i32 : i32
  }
  func.func @transform_3(%arg0: i32) -> (i32, i32) {
    %c0_i32 = arith.constant 0 : i32
    %c0_i32_0 = arith.constant 0 : i32
    return %arg0, %c0_i32 : i32, i32
  }
  func.func @transform_4(%arg0: i32) -> (i32, i32) {
    %c0_i32 = arith.constant 0 : i32
    %c0_i32_0 = arith.constant 0 : i32
    return %arg0, %c0_i32 : i32, i32
  }
}

</mosaic_0001>

<bundles_post_ra>
// kernel: tpu_custom_call.1
= control target key start
LH: loop header
LB: loop body
LE: loop exit
PB: predicated region body
PF: predicated region fallthrough
CT: control target
= control target key end

     0   :  { %s1031_s0 = inlined_call_operand.hbm [shape: f32[16,4096], index: 0, kind: input, shape index: {}]   ;;  %s1032_s1 = inlined_call_operand.hbm [shape: f32[1,4096], index: 1, kind: input, shape index: {}]   ;;  %s1033_s2 = inlined_call_operand.<no memory space> [shape: f32[1], index: 2, kind: input, shape index: {}]   ;;  %s1034_s3 = inlined_call_operand.vmem [shape: s32[16,1], index: 3, kind: input, shape index: {}]   ;;  %s1035_s4 = inlined_call_operand.vmem [shape: f32[16,1], index: 4, kind: output, shape index: {}]  }
   0x1   :  { %9 = sst [smem:[#allocation2]] %s1033_s2 }
   0x2   :  { %10 = vsyncpa [#allocation4], 0 }
   0x3   :  { %12 = vsyncpa [#allocation4 + $0x1], 0 }
   0x4   :  { %13 = vsyncpa [#allocation6], 0  ;;  %s798_s17 = smov 0   ;;  %s800_s18 = smov 0  }
   0x5   :  { %s802_s19 = smov 0   ;;  %s804_s20 = smov 0  }
   0x6 LB: > { %s817_s2 = sadd.s32 4294967295, %s766_s20   ;;  %p39_p0 = scmp.ne.s32.totalorder %s758_s18, %s754_s17  ;;  %s766_s20 = sphi %s804_s20, %s1053_s20   ;;  %s762_s19 = sphi %s802_s19, %s1052_s19   ;;  %s758_s18 = sphi %s800_s18, %s1051_s18   ;;  %s754_s17 = sphi %s798_s17, %s1050_s17  }
   0x7   : > { %p1036_p1 = scmp.eq.s32.totalorder %s817_s2, 0  ;;  %p606_p2 = scmp.ge.s32.totalorder %s766_s20, 1 }
   0x8   : > { %p144_p3 = scmp.lt.s32.totalorder %s766_s20, 3  ;;  %s768_s23 = smov [#allocation5]  }
   0x9   : > { %p825_p4 = por %p1036_p1, %p39_p0  ;;  %s157_s24 = sshll.u32 %s768_s23, 4  ;;  %s158_s24 = int_to_ptr.vmem [resolvable:$true] %s157_s24 }
   0xa   : > { %p829_p5 = pnand %p606_p2, %p144_p3  ;;  %s836_s25 = sadd.s32 1, %s766_s20  }
   0xb   : > { %s1039_s21 = scalar_select %p825_p4, 1, 0 }
   0xc   : > { %s1040_s22 = scalar_select %p829_p5, 1, 0 }
   0xd   : > { %p626_p6 = pneg %p829_p5  ;;  %s23_s27 = ssub.s32 %s766_s20, %s836_s25 }
   0xe   : > { %p846_p8 = scmp.eq.s32.totalorder %s23_s27, 0  ;;  %s26_s29 = sadd.s32 1, %s762_s19 }
   0xf   : > { %p840_p7 = pnand %p626_p6, %p1036_p1  ;;  %s670_s6 = scalar_lea.hbm %s1032_s1, 512 }
  0x10   : > { %s1042_s28 = scalar_select %p846_p8, 1, 0 }
  0x11   : > { %p671_p10 = scmp.ne.s32.totalorder %s1032_s1, %s670_s6  ;;  %p672_p11 = pneg %p840_p7 }
  0x12   : > { %p677_p0 = scmp.lt.u32.totalorder %s670_s6, %s1032_s1 }
  0x13   : > { %p673_p12 = pnand %p672_p11, %p671_p10 }
  0x15   : > { %p674_p13 = pneg %p673_p12 }
  0x17   : > { %p679_p2 = pnand %p677_p0, %p674_p13 }
  0x19   : > { %682 = shalt.err (!%p679_p2)
}
  0x1a   : > { %s683_s11 = scalar_lea.vmem %s158_s24, 512  ;;  %p691_p9 = scmp.lt.s32.totalorder %s158_s24, %s158_s24 }
  0x1b   : > { %p684_p3 = scmp.ne.s32.totalorder %s158_s24, %s683_s11  ;;  %p692_p4 = scmp.lt.s32.totalorder %s683_s11, %s683_s11 }
  0x1d   : > { %p686_p6 = pnand %p684_p3, %p672_p11  ;;  %p693_p5 = por %p692_p4, %p691_p9 }
  0x1f   : > { %p687_p1 = pneg %p686_p6 }
  0x21   : > { %p694_p8 = pnand %p693_p5, %p687_p1 }
  0x23   : > { %697 = shalt.err (!%p694_p8)
}
  0x24   : > { %629 = dma.hbm_to_vmem [thread:$0]  (!%p840_p7), %s1032_s1, 512, %s158_s24, [#allocation6]  }
  0x25   : > { %p1043_p10 = scmp.ne.s32.totalorder %s1042_s28, 0  ;;  %p34_p4 = scmp.eq.s32.totalorder %s766_s20, 0 }
  0x26   : > { %p635_p1 = scmp.lt.s32.totalorder %s766_s20, 2  ;;  %s171_s15 = sand.u32 1, %s762_s19  }
  0x27   : > { %s872_s14 = scalar_select %p1043_p10, %s762_s19, %s26_s29  }
  0x28   : > { %s619_s16 = sshll.u32 %s766_s20, 12  ;;  %p1044_p5 = scmp.ne.s32.totalorder %s762_s19, %s758_s18 }
  0x29   : > { %s609_s17 = sshll.u32 %s171_s15, 8  ;;  %s884_s27 = scalar_lea.hbm %s1031_s0, %s619_s16 }
  0x2a   : > { %p35_p8 = por %p34_p4, %p1044_p5  ;;  %s175_s28 = scalar_lea.vmem [#allocation3], %s609_s17 }
  0x2b   : > { %s183_s20 = sshll.u32 %s175_s28, 4  ;;  %s172_s29 = scalar_lea.sflag [#allocation4], %s171_s15  ;;  %s890_s20 = int_to_ptr.vmem [resolvable:$true] %s183_s20 }
  0x2c   : > { %p886_p7 = pnand %p635_p1, %p35_p8  ;;  %s698_s30 = scalar_lea.hbm %s884_s27, 4096 }
  0x2d   : > { %p699_p9 = scmp.ne.s32.totalorder %s884_s27, %s698_s30  ;;  %s703_s7 = scalar_lea.hbm %s1031_s0, 8192 }
  0x2e   : > { %p700_p11 = pneg %p886_p7  ;;  %p704_p0 = scmp.lt.u32.totalorder %s884_s27, %s1031_s0 }
  0x2f   : > { %p705_p2 = scmp.lt.u32.totalorder %s703_s7, %s698_s30  ;;  %p707_p6 = scmp.lt.u32.totalorder %s698_s30, %s884_s27 }
  0x30   : > { %p701_p12 = pnand %p700_p11, %p699_p9 }
  0x31   : > { %p706_p3 = por %p705_p2, %p704_p0 }
  0x32   : > { %p702_p13 = pneg %p701_p12 }
  0x33   : > { %p708_p10 = por %p707_p6, %p706_p3 }
  0x35   : > { %p709_p4 = pnand %p708_p10, %p702_p13 }
  0x37   : > { %712 = shalt.err (!%p709_p4)
}
  0x38   : > { %s713_s10 = scalar_lea.vmem %s890_s20, 4096  ;;  %s769_s11 = smov [#allocation3]  }
  0x39   : > { %p714_p1 = scmp.ne.s32.totalorder %s890_s20, %s713_s10  ;;  %s718_s12 = sshll.u32 %s769_s11, 4  ;;  %s719_s12 = int_to_ptr.vmem [resolvable:$false] %s718_s12 }
  0x3a   : > { %s720_s13 = scalar_lea.vmem %s719_s12, 8192  ;;  %p721_p9 = scmp.lt.s32.totalorder %s890_s20, %s719_s12 }
  0x3b   : > { %p716_p5 = pnand %p714_p1, %p700_p11  ;;  %p722_p12 = scmp.lt.s32.totalorder %s720_s13, %s713_s10 }
  0x3d   : > { %p717_p8 = pneg %p716_p5  ;;  %p723_p0 = por %p722_p12, %p721_p9 }
  0x3f   : > { %p724_p2 = pnand %p723_p0, %p717_p8 }
  0x41   : > { %727 = shalt.err (!%p724_p2)
}
  0x42   : > { %633 = dma.hbm_to_vmem [thread:$0]  (!%p886_p7), %s884_s27, 4096, %s890_s20, %s172_s29  }
  0x43   : > { %p1046_p13 = scmp.ne.s32.totalorder %s1040_s22, 0 }
  0x44   : > { %s201_s15 = sand.u32 (!%p1046_p13), 1, %s758_s18   ;;  %p1047_p11 = scmp.ne.s32.totalorder (!%p1046_p13), %s1039_s21, 0 }
  0x45   : > { %199 = sbr.rel (%p1046_p13) target bundleno = 298 (0x12a), region = 36  ;;  %s613_s16 = sshll.u32 (!%p1046_p13), %s201_s15, 8 }
  0x46   : > { %s202_s17 = scalar_lea.sflag (!%p1046_p13), [#allocation4], %s201_s15  ;;  %s920_s23 = scalar_lea.vmem (!%p1046_p13), [#allocation3], %s613_s16 }
  0x4c   : > { %745 = dma.done.wait (%p1047_p11), %s202_s17, 4096  }
  0x4d   : > { %747 = vsyncadd (%p1047_p11), %s202_s17, 4294963200  ;;  %p1048_p3 = scmp.eq.s32.totalorder %s817_s2, 0 }
  0x4f   : > { %749 = dma.done.wait (%p1048_p3), [#allocation6], 512   ;;  %p1049_p7 = pmov %p1048_p3 }
  0x50   : > { %v285_v0 = vlaneseq  ;;  %v277_v4 = vld [vmem:[#allocation5] sm:$0xff]  ;;  %v246_v10 = vld [vmem:[%s920_s23 + $0x8] sm:$0xff]  ;;  %v247_v13 = vld [vmem:[%s920_s23 + $0x10] sm:$0xff]  ;;  %p237_p6 = scmp.lt.s32.totalorder %s817_s2, 1  ;;  %s510_s21 = sld [smem:[#allocation2]]  ;;  %vm516_vm1 = vcmask 7168  }
  0x51   : > { %751 = vsyncadd (%p1049_p7), [#allocation6], 4294966784  ;;  %v245_v9 = vld [vmem:[%s920_s23] sm:$0xff]  ;;  %v248_v18 = vld [vmem:[%s920_s23 + $0x18] sm:$0xff] }
  0x52   : > { %v286_v1 = vshrl.u32 %v285_v0, 7  ;;  %v249_v22 = vld [vmem:[%s920_s23 + $0x20] sm:$0xff]  ;;  %v250_v27 = vld [vmem:[%s920_s23 + $0x28] sm:$0xff]  ;;  %v251_v31 = vld [vmem:[%s920_s23 + $0x30] sm:$0xff]  ;;  %s1055_s2 = smov (!%p237_p6, %s817_s2), 1 }
  0x53   : > { %v278_v32 = vld [vmem:[#allocation5 + $0x8] sm:$0xff]  ;;  %v252_v36 = vld [vmem:[%s920_s23 + $0x38] sm:$0xff]  ;;  %v253_v40 = vld [vmem:[%s920_s23 + $0x40] sm:$0xff]  ;;  %s615_s22 = sshll.u32 %s1055_s2, 3 }
  0x54   : > { %v930_v2 = vsub.s32 0, %v286_v1  ;;  %v932_v3 = vsub.s32 1, %v286_v1  ;;  %v934_v5 = vsub.s32 2, %v286_v1  ;;  %v938_v8 = vsub.s32 3, %v286_v1  ;;  %v254_v44 = vld [vmem:[%s920_s23 + $0x48] sm:$0xff]  ;;  %v255_v48 = vld [vmem:[%s920_s23 + $0x50] sm:$0xff]  ;;  %s240_s24 = scalar_lea.vmem %s1034_s3, %s615_s22  ;;  %s244_s29 = scalar_lea.vmem %s1035_s4, %s615_s22 }
  0x55   : > { %v943_v12 = vsub.s32 4, %v286_v1  ;;  %v947_v15 = vsub.s32 5, %v286_v1  ;;  %v951_v20 = vsub.s32 6, %v286_v1  ;;  %v955_v24 = vsub.s32 7, %v286_v1  ;;  %v256_v52 = vld [vmem:[%s920_s23 + $0x58] sm:$0xff]  ;;  %v257_v56 = vld [vmem:[%s920_s23 + $0x60] sm:$0xff] }
  0x56   : > { %v288_v6 = vrot.slane %v277_v4, %v930_v2  ;;  %v292_v7 = vrot.slane %v277_v4, %v932_v3  ;;  %v296_v11 = vrot.slane %v277_v4, %v934_v5  ;;  %v300_v14 = vrot.slane %v277_v4, %v938_v8  ;;  %v258_v60 = vld [vmem:[%s920_s23 + $0x68] sm:$0xff]  ;;  %v259_v0 = vld [vmem:[%s920_s23 + $0x70] sm:$0xff] }
  0x57   : > { %v304_v19 = vrot.slane %v277_v4, %v943_v12  ;;  %v308_v23 = vrot.slane %v277_v4, %v947_v15  ;;  %v312_v28 = vrot.slane %v277_v4, %v951_v20  ;;  %v316_v33 = vrot.slane %v277_v4, %v955_v24  ;;  %v279_v1 = vld [vmem:[#allocation5 + $0x10] sm:$0xff] }
  0x58   : > { %v445_v16 = vmul.f32 %v288_v6, %v245_v9  ;;  %v446_v17 = vmul.f32 %v292_v7, %v246_v10  ;;  %v447_v21 = vmul.f32 %v296_v11, %v247_v13  ;;  %v448_v25 = vmul.f32 %v300_v14, %v248_v18  ;;  %v260_v9 = vld [vmem:[%s920_s23 + $0x78] sm:$0xff]  ;;  %v261_v14 = vld [vmem:[%s920_s23 + $0x80] sm:$0xff] }
  0x59   : > { %v449_v29 = vmul.f32 %v304_v19, %v249_v22  ;;  %v450_v34 = vmul.f32 %v308_v23, %v250_v27  ;;  %v320_v37 = vrot.slane %v278_v32, %v930_v2  ;;  %v451_v38 = vmul.f32 %v312_v28, %v251_v31  ;;  %v262_v19 = vld [vmem:[%s920_s23 + $0x88] sm:$0xff] }
  0x5a   : > { %v477_v26 = vadd.f32 %v446_v17, %v445_v16  ;;  %v324_v41 = vrot.slane %v278_v32, %v932_v3  ;;  %v452_v42 = vmul.f32 %v316_v33, %v252_v36  ;;  %v328_v45 = vrot.slane %v278_v32, %v934_v5  ;;  %v265_v33 = vld [vmem:[%s920_s23 + $0xa0] sm:$0xff] }
  0x5b   : > { %v453_v46 = vmul.f32 %v320_v37, %v253_v40  ;;  %v332_v49 = vrot.slane %v278_v32, %v938_v8  ;;  %v336_v53 = vrot.slane %v278_v32, %v943_v12  ;;  %v340_v57 = vrot.slane %v278_v32, %v947_v15  ;;  %v266_v37 = vld [vmem:[%s920_s23 + $0xa8] sm:$0xff] }
  0x5c   : > { %v478_v30 = vadd.f32 %v477_v26, %v447_v21  ;;  %v454_v50 = vmul.f32 %v324_v41, %v254_v44  ;;  %v455_v54 = vmul.f32 %v328_v45, %v255_v48  ;;  %v344_v61 = vrot.slane %v278_v32, %v951_v20  ;;  %v267_v41 = vld [vmem:[%s920_s23 + $0xb0] sm:$0xff] }
  0x5d   : > { %v456_v58 = vmul.f32 %v332_v49, %v256_v52  ;;  %v457_v62 = vmul.f32 %v336_v53, %v257_v56  ;;  %v348_v4 = vrot.slane %v278_v32, %v955_v24  ;;  %v458_v6 = vmul.f32 %v340_v57, %v258_v60 }
  0x5e   : > { %v479_v35 = vadd.f32 %v478_v30, %v448_v25  ;;  %v352_v10 = vrot.slane %v279_v1, %v930_v2  ;;  %v459_v11 = vmul.f32 %v344_v61, %v259_v0  ;;  %v356_v16 = vrot.slane %v279_v1, %v932_v3  ;;  %v263_v25 = vld [vmem:[%s920_s23 + $0x90] sm:$0xff]  ;;  %v272_v61 = vld [vmem:[%s920_s23 + $0xd8] sm:$0xff]  ;;  %v273_v0 = vld [vmem:[%s920_s23 + $0xe0] sm:$0xff] }
  0x5f   : > { %v460_v17 = vmul.f32 %v348_v4, %v260_v9  ;;  %v360_v21 = vrot.slane %v279_v1, %v934_v5  ;;  %v364_v26 = vrot.slane %v279_v1, %v938_v8  ;;  %v368_v30 = vrot.slane %v279_v1, %v943_v12 }
  0x60   : > { %v480_v39 = vadd.f32 %v479_v35, %v449_v29  ;;  %v461_v22 = vmul.f32 %v352_v10, %v261_v14  ;;  %v462_v27 = vmul.f32 %v356_v16, %v262_v19  ;;  %v264_v29 = vld [vmem:[%s920_s23 + $0x98] sm:$0xff]  ;;  %v275_v10 = vld [vmem:[%s920_s23 + $0xf0] sm:$0xff] }
  0x61   : > { %v463_v31 = vmul.f32 %v360_v21, %v263_v25  ;;  %v464_v35 = vmul.f32 %v364_v26, %v264_v29 }
  0x62   : > { %v481_v43 = vadd.f32 %v480_v39, %v450_v34  ;;  %v372_v34 = vrot.slane %v279_v1, %v947_v15  ;;  %v465_v39 = vmul.f32 %v368_v30, %v265_v33 }
  0x64   : > { %v482_v47 = vadd.f32 %v481_v43, %v451_v38  ;;  %v376_v38 = vrot.slane %v279_v1, %v951_v20  ;;  %v380_v43 = vrot.slane %v279_v1, %v955_v24  ;;  %v466_v44 = vmul.f32 %v372_v34, %v266_v37 }
  0x66   : > { %v483_v51 = vadd.f32 %v482_v47, %v452_v42  ;;  %v280_v42 = vld [vmem:[#allocation5 + $0x18] sm:$0xff]  ;;  %v467_v48 = vmul.f32 %v376_v38, %v267_v41 }
  0x67   : > { %v384_v47 = vrot.slane %v280_v42, %v930_v2  ;;  %v404_v1 = vrot.slane %v280_v42, %v947_v15 }
  0x68   : > { %v484_v55 = vadd.f32 %v483_v51, %v453_v46  ;;  %v268_v46 = vld [vmem:[%s920_s23 + $0xb8] sm:$0xff]  ;;  %v388_v51 = vrot.slane %v280_v42, %v932_v3 }
  0x69   : > { %v468_v52 = vmul.f32 %v380_v43, %v268_v46 }
  0x6a   : > { %v485_v59 = vadd.f32 %v484_v55, %v454_v50  ;;  %v269_v50 = vld [vmem:[%s920_s23 + $0xc0] sm:$0xff]  ;;  %v392_v55 = vrot.slane %v280_v42, %v934_v5  ;;  %v274_v5 = vld [vmem:[%s920_s23 + $0xe8] sm:$0xff] }
  0x6b   : > { %v469_v56 = vmul.f32 %v384_v47, %v269_v50 }
  0x6c   : > { %v486_v63 = vadd.f32 %v485_v59, %v455_v54  ;;  %v270_v54 = vld [vmem:[%s920_s23 + $0xc8] sm:$0xff]  ;;  %v396_v59 = vrot.slane %v280_v42, %v938_v8 }
  0x6d   : > { %v470_v60 = vmul.f32 %v388_v51, %v270_v54 }
  0x6e   : > { %v487_v7 = vadd.f32 %v486_v63, %v456_v58  ;;  %v271_v58 = vld [vmem:[%s920_s23 + $0xd0] sm:$0xff]  ;;  %v472_v4 = vmul.f32 %v396_v59, %v272_v61 }
  0x6f   : > { %v471_v63 = vmul.f32 %v392_v55, %v271_v58 }
  0x70   : > { %v488_v13 = vadd.f32 %v487_v7, %v457_v62  ;;  %v400_v62 = vrot.slane %v280_v42, %v943_v12  ;;  %v408_v7 = vrot.slane %v280_v42, %v951_v20  ;;  %v276_v12 = vld [vmem:[%s920_s23 + $0xf8] sm:$0xff]  ;;  %v513_v20 = vld [vmem:[%s240_s24] sm:$0xff] }
  0x71   : > { %vm514_vm0 = vcmp.ne.s32.totalorder %v513_v20, 0 }
  0x72   : > { %v489_v18 = vadd.f32 %v488_v13, %v458_v6  ;;  %v473_v9 = vmul.f32 %v400_v62, %v273_v0  ;;  %v474_v13 = vmul.f32 %v404_v1, %v274_v5  ;;  %v475_v16 = vmul.f32 %v408_v7, %v275_v10 }
  0x74   : > { %v490_v23 = vadd.f32 %v489_v18, %v459_v11  ;;  %v412_v11 = vrot.slane %v280_v42, %v955_v24  ;;  %v511_v24 = vstv %s510_s21 }
  0x76   : > { %v491_v28 = vadd.f32 %v490_v23, %v460_v17  ;;  %v476_v18 = vmul.f32 %v412_v11, %v276_v12 }
  0x78   : > { %v492_v32 = vadd.f32 %v491_v28, %v461_v22 }
  0x7a   : > { %v493_v36 = vadd.f32 %v492_v32, %v462_v27 }
  0x7c   : > { %v494_v40 = vadd.f32 %v493_v36, %v463_v31 }
  0x7e   : > { %v495_v45 = vadd.f32 %v494_v40, %v464_v35 }
  0x80   : > { %v496_v49 = vadd.f32 %v495_v45, %v465_v39 }
  0x82   : > { %v497_v53 = vadd.f32 %v496_v49, %v466_v44 }
  0x84   : > { %v498_v57 = vadd.f32 %v497_v53, %v467_v48 }
  0x86   : > { %v499_v2 = vadd.f32 %v498_v57, %v468_v52 }
  0x88   : > { %v500_v3 = vadd.f32 %v499_v2, %v469_v56 }
  0x8a   : > { %v501_v6 = vadd.f32 %v500_v3, %v470_v60 }
  0x8c   : > { %v502_v8 = vadd.f32 %v501_v6, %v471_v63 }
  0x8e   : > { %v503_v14 = vadd.f32 %v502_v8, %v472_v4 }
  0x90   : > { %v504_v17 = vadd.f32 %v503_v14, %v473_v9 }
  0x92   : > { %v505_v19 = vadd.f32 %v504_v17, %v474_v13 }
  0x94   : > { %v506_v15 = vadd.f32 %v505_v19, %v475_v16 }
  0x96   : > { %v507_v21 = vadd.f32 %v506_v15, %v476_v18 }
  0x98   : > { %508 = vadd.xlane.f32.xlu0 %v507_v21 }
 0x125   : > { %v509_v22 = vpop.xlane.xlu0 %508 }
 0x126   : > { %v512_v23 = vadd.f32 %v511_v24, %v509_v22 }
 0x128   : > { %v515_v25 = vsel %vm514_vm0, %v512_v23, -inf }
 0x129   : > { %517 = vst.msk [vmem:[%s244_s29] sm:$0xff] %vm516_vm1, %v515_v25 }
 0x12a PF: > { %p16_p10 = scmp.ge.s32.totalorder %s836_s25, 4   ;;  %s1050_s17 = smov %s758_s18 }
 0x12b   : > { %s1051_s18 = smov %s762_s19  ;;  %s1052_s19 = smov %s872_s14 }
 0x12c   : > { %s1053_s20 = smov %s836_s25  ;;  %18 = sbr.rel (!%p16_p10) target bundleno = 6 (0x6), region = 83 }
 0x133   :  { %537 = vsyncpa [#allocation4], 1 }
 0x134   :  { %539 = vsyncpa [#allocation4 + $0x1], 1 }
 0x135   :  { %540 = vsyncpa [#allocation6], 1 }

</bundles_post_ra>
